<compile_context>
chip_gen: v6e
topology: v6e:2x2x1
jax: 0.10.0
libtpu: 0.0.40
codegen_flags: <defaults>
</compile_context>

<pallas_src>
import functools

import jax
import jax.numpy as jnp
from jax.experimental import pallas as pl
from jax.experimental.pallas import tpu as pltpu

_VMEM_LIMIT_BYTES = 32 * 1024 * 1024          # explicit scoped-VMEM limit
_BLOCK_BUDGET_BYTES = 4 * 1024 * 1024         # per (BN, C, T) block (f32)


def _choose_blocks(n, c, hw, elem_bytes=4, block_budget_bytes=_BLOCK_BUDGET_BYTES):
    """Pick (BN, T): BN divides N, T divides HW and is a multiple of 128
    (lane-dense) or the full HW axis."""
    if hw % 128 == 0:
        t = 128
        for k in range(1, hw // 128 + 1):
            cand = 128 * k
            if hw % cand == 0 and c * cand * elem_bytes <= block_budget_bytes:
                t = cand
    else:
        # TODO(synk): HW not a multiple of 128 -> single full-width block.
        t = hw
    bn = 1
    for d in range(1, n + 1):
        if n % d == 0 and d * c * t * elem_bytes <= block_budget_bytes:
            bn = d
    return bn, t


def _stats_kernel(x_ref, w_ref, b_ref, rm_ref, rv_ref,
                  scale_ref, shift_ref, nrm_ref, nrv_ref,
                  sum_ref, sumsq_ref, *, eps, momentum, m_total):
    i = pl.program_id(0)
    j = pl.program_id(1)

    @pl.when((i == 0) & (j == 0))
    def _init():
        sum_ref[...] = jnp.zeros_like(sum_ref)
        sumsq_ref[...] = jnp.zeros_like(sumsq_ref)

    x = x_ref[...].astype(jnp.float32)                 # (BN, C, T)
    ps = jnp.sum(x, axis=2, keepdims=True)             # (BN, C, 1) lane reduce
    pss = jnp.sum(x * x, axis=2, keepdims=True)        # (BN, C, 1)
    sum_ref[...] += jnp.sum(ps, axis=0)                # (C, 1)
    sumsq_ref[...] += jnp.sum(pss, axis=0)             # (C, 1)

    @pl.when((i == pl.num_programs(0) - 1) & (j == pl.num_programs(1) - 1))
    def _finalize():
        inv_m = 1.0 / m_total
        mean = sum_ref[...] * inv_m                    # (C, 1)
        var = sumsq_ref[...] * inv_m - mean * mean     # biased variance
        var = jnp.maximum(var, 0.0)                    # cancellation guard
        inv_std = jax.lax.rsqrt(var + eps)
        scale = w_ref[...] * inv_std
        scale_ref[...] = scale
        shift_ref[...] = b_ref[...] - mean * scale
        # PyTorch updates running stats with the *unbiased* variance.
        unbiased = var * (m_total / max(m_total - 1.0, 1.0))
        nrm_ref[...] = (1.0 - momentum) * rm_ref[...] + momentum * mean
        nrv_ref[...] = (1.0 - momentum) * rv_ref[...] + momentum * unbiased


def _normalize_kernel(x_ref, scale_ref, shift_ref, y_ref):
    x = x_ref[...].astype(jnp.float32)                 # (BN, C, T)
    # (C, 1) broadcasts over the lane axis -> 2 VALU ops per element.
    y = x * scale_ref[...] + shift_ref[...]
    y_ref[...] = y.astype(y_ref.dtype)


def batch_norm_pallas(x3d, weight, bias, running_mean, running_var,
                      *, eps=1e-5, momentum=0.1):
    """x3d: (N, C, HW).  weight/bias/running_*: (C, 1) float32.

    Returns (y3d, new_running_mean (C,1), new_running_var (C,1))."""
    n, c, hw = x3d.shape
    bn, t = _choose_blocks(n, c, hw)
    grid = (n // bn, hw // t)
    m_total = float(n * hw)

    x_spec = pl.BlockSpec((bn, c, t), lambda i, j: (i, 0, j))
    cvec_spec = pl.BlockSpec((c, 1), lambda i, j: (0, 0))
    cvec_shape = jax.ShapeDtypeStruct((c, 1), jnp.float32)

    # Pass 1: per-channel statistics -> scale/shift + updated running stats.
    scale, shift, new_rm, new_rv = pl.pallas_call(
        functools.partial(_stats_kernel, eps=eps, momentum=momentum,
                          m_total=m_total),
        grid=grid,
        in_specs=[x_spec, cvec_spec, cvec_spec, cvec_spec, cvec_spec],
        out_specs=(cvec_spec, cvec_spec, cvec_spec, cvec_spec),
        out_shape=(cvec_shape, cvec_shape, cvec_shape, cvec_shape),
        scratch_shapes=[pltpu.VMEM((c, 1), jnp.float32),
                        pltpu.VMEM((c, 1), jnp.float32)],
        compiler_params=pltpu.CompilerParams(
            dimension_semantics=("arbitrary", "arbitrary"),
            vmem_limit_bytes=_VMEM_LIMIT_BYTES),
    )(x3d, weight, bias, running_mean, running_var)

    # Pass 2: stream x again, y = x * scale + shift.
    y3d = pl.pallas_call(
        _normalize_kernel,
        grid=grid,
        in_specs=[x_spec, cvec_spec, cvec_spec],
        out_specs=x_spec,
        out_shape=jax.ShapeDtypeStruct((n, c, hw), x3d.dtype),
        compiler_params=pltpu.CompilerParams(
            dimension_semantics=("parallel", "parallel"),
            vmem_limit_bytes=_VMEM_LIMIT_BYTES),
    )(x3d, scale, shift)

    return y3d, new_rm, new_rv


class MetaBatchNormLayerPallas:
    """JAX/Pallas port of MetaBatchNormLayer (forward pass)."""

    def __init__(self, num_features, *, eps=1e-5, momentum=0.1,
                 use_per_step_bn_statistics=True,
                 number_of_training_steps_per_iter=5,
                 enable_inner_loop_optimizable_bn_params=False):
        self.num_features = num_features
        self.eps = eps
        self.momentum = momentum
        self.use_per_step_bn_statistics = use_per_step_bn_statistics
        self.enable_inner_loop_optimizable_bn_params = \
            enable_inner_loop_optimizable_bn_params

        c = num_features
        steps = number_of_training_steps_per_iter
        if use_per_step_bn_statistics:
            self.running_mean = jnp.zeros((steps, c), jnp.float32)
            self.running_var = jnp.ones((steps, c), jnp.float32)
            # Deterministic, non-trivial affine params (PyTorch inits to
            # ones/zeros; made non-trivial here so the test is meaningful).
            self.bias = 0.01 * jnp.tile(jnp.arange(c, dtype=jnp.float32), (steps, 1))
            self.weight = 1.0 + 0.1 * jnp.tile(jnp.arange(c, dtype=jnp.float32), (steps, 1))
        else:
            self.running_mean = jnp.zeros((c,), jnp.float32)
            self.running_var = jnp.zeros((c,), jnp.float32)
            self.bias = 0.01 * jnp.arange(c, dtype=jnp.float32)
            self.weight = 1.0 + 0.1 * jnp.arange(c, dtype=jnp.float32)
        if enable_inner_loop_optimizable_bn_params:
            self.bias = 0.01 * jnp.arange(c, dtype=jnp.float32)
            self.weight = 1.0 + 0.1 * jnp.arange(c, dtype=jnp.float32)
        self.backup_running_mean = jnp.zeros_like(self.running_mean)
        self.backup_running_var = jnp.ones_like(self.running_var)

    def forward(self, x_nchw, num_step, params=None, training=False,
                backup_running_statistics=False):
        if params is not None:
            weight, bias = params['weight'], params['bias']
        else:
            weight, bias = self.weight, self.bias

        if self.use_per_step_bn_statistics:
            running_mean = self.running_mean[num_step]
            running_var = self.running_var[num_step]
            if params is None and not self.enable_inner_loop_optimizable_bn_params:
                bias = self.bias[num_step]
                weight = self.weight[num_step]
        else:
            # F.batch_norm(training=True) with running stats None: batch stats
            # are used, nothing is updated -> feed dummies and drop outputs.
            running_mean = jnp.zeros((self.num_features,), jnp.float32)
            running_var = jnp.ones((self.num_features,), jnp.float32)

        if backup_running_statistics and self.use_per_step_bn_statistics:
            self.backup_running_mean = self.running_mean
            self.backup_running_var = self.running_var

        n, c, h, w = x_nchw.shape
        assert c == self.num_features
        # NCHW -> (N, C, H*W): free reshape, no transpose / extra HBM traffic.
        x3d = x_nchw.reshape(n, c, h * w)

        y3d, new_rm, new_rv = batch_norm_pallas(
            x3d,
            weight.reshape(c, 1).astype(jnp.float32),
            bias.reshape(c, 1).astype(jnp.float32),
            running_mean.reshape(c, 1).astype(jnp.float32),
            running_var.reshape(c, 1).astype(jnp.float32),
            eps=self.eps, momentum=self.momentum)

        # Functional running-stat "update" (in-place side effect in PyTorch).
        # TODO(synk): this mutates Python-side state; under jit/scan use the
        # returned new_rm/new_rv functionally instead.
        if self.use_per_step_bn_statistics:
            self.running_mean = self.running_mean.at[num_step].set(new_rm[:, 0])
            self.running_var = self.running_var.at[num_step].set(new_rv[:, 0])

        return y3d.reshape(n, c, h, w)

    def restore_backup_stats(self):
        if self.use_per_step_bn_statistics:
            self.running_mean = self.backup_running_mean
            self.running_var = self.backup_running_var


def _reference_batch_norm(x_nchw, weight, bias, eps):
    mean = jnp.mean(x_nchw, axis=(0, 2, 3), keepdims=True)
    var = jnp.mean((x_nchw - mean) ** 2, axis=(0, 2, 3), keepdims=True)
    w = weight.reshape(1, -1, 1, 1)
    b = bias.reshape(1, -1, 1, 1)
    return (x_nchw - mean) / jnp.sqrt(var + eps) * w + b, mean, var


if __name__ == "__main__":
    key = jax.random.PRNGKey(0)
    N, C, H, W = 2, 4, 16, 16
    x = jax.random.normal(key, (N, C, H, W), dtype=jnp.float32) * 2.0 + 0.5

    layer = MetaBatchNormLayerPallas(
        num_features=C, use_per_step_bn_statistics=True,
        number_of_training_steps_per_iter=5)

    num_step = 2
    out = layer.forward(x, num_step=num_step)
    out = jax.block_until_ready(out)

    y_ref, mean_ref, var_ref = _reference_batch_norm(
        x, layer.weight[num_step], layer.bias[num_step], layer.eps)

    assert out.shape == (N, C, H, W)
    assert jnp.allclose(out, y_ref, atol=1e-3, rtol=1e-3), \
        f"max abs err = {jnp.max(jnp.abs(out - y_ref))}"

    # Check the running-stat update side effect.
    m = N * H * W
    unbiased = var_ref.reshape(C) * (m / (m - 1))
    rm_expect = layer.momentum * mean_ref.reshape(C)          # prev mean = 0
    rv_expect = (1.0 - layer.momentum) * 1.0 + layer.momentum * unbiased
    assert jnp.allclose(layer.running_mean[num_step], rm_expect, atol=1e-3), \
        "running_mean mismatch"
    assert jnp.allclose(layer.running_var[num_step], rv_expect, atol=1e-3), \
        "running_var mismatch"

    print("KERNEL_OK")
</pallas_src>

<mosaic_0001>
module attributes {stable_mosaic.version = 11 : i64} {
  func.func @_stats_kernel(%arg0: i32, %arg1: i32, %arg2: memref<2x4x256xf32, #tpu.memory_space<vmem>>, %arg3: memref<4x1xf32, #tpu.memory_space<vmem>>, %arg4: memref<4x1xf32, #tpu.memory_space<vmem>>, %arg5: memref<4x1xf32, #tpu.memory_space<vmem>>, %arg6: memref<4x1xf32, #tpu.memory_space<vmem>>, %arg7: memref<4x1xf32, #tpu.memory_space<vmem>>, %arg8: memref<4x1xf32, #tpu.memory_space<vmem>>, %arg9: memref<4x1xf32, #tpu.memory_space<vmem>>, %arg10: memref<4x1xf32, #tpu.memory_space<vmem>>, %arg11: memref<4x1xf32, #tpu.memory_space<vmem>>, %arg12: memref<4x1xf32, #tpu.memory_space<vmem>>) attributes {dimension_semantics = [#tpu.dimension_semantics<arbitrary>, #tpu.dimension_semantics<arbitrary>], iteration_bounds = array<i64: 1, 1>, scalar_prefetch = 0 : i64, scratch_operands = 2 : i64, tpu.core_type = #tpu.core_type<tc>, window_params = [{transform_indices = @transform_0, window_bounds = array<i64: 2, 4, 256>}, {pipeline_mode = #tpu.pipeline_mode<synchronous>, transform_indices = @transform_1, window_bounds = array<i64: 4, 1>}, {pipeline_mode = #tpu.pipeline_mode<synchronous>, transform_indices = @transform_2, window_bounds = array<i64: 4, 1>}, {pipeline_mode = #tpu.pipeline_mode<synchronous>, transform_indices = @transform_3, window_bounds = array<i64: 4, 1>}, {pipeline_mode = #tpu.pipeline_mode<synchronous>, transform_indices = @transform_4, window_bounds = array<i64: 4, 1>}, {pipeline_mode = #tpu.pipeline_mode<synchronous>, transform_indices = @transform_5, window_bounds = array<i64: 4, 1>}, {pipeline_mode = #tpu.pipeline_mode<synchronous>, transform_indices = @transform_6, window_bounds = array<i64: 4, 1>}, {pipeline_mode = #tpu.pipeline_mode<synchronous>, transform_indices = @transform_7, window_bounds = array<i64: 4, 1>}, {pipeline_mode = #tpu.pipeline_mode<synchronous>, transform_indices = @transform_8, window_bounds = array<i64: 4, 1>}]} {
    %c0_i32 = arith.constant 0 : i32
    %0 = arith.cmpi eq, %arg0, %c0_i32 : i32
    %c0_i32_0 = arith.constant 0 : i32
    %1 = arith.cmpi eq, %arg1, %c0_i32_0 : i32
    %2 = arith.andi %0, %1 : i1
    %3 = arith.extui %2 : i1 to i32
    %c0_i32_1 = arith.constant 0 : i32
    %4 = arith.cmpi ne, %3, %c0_i32_1 : i32
    scf.if %4 {
      %cst_18 = arith.constant 0.000000e+00 : f32
      %24 = vector.broadcast %cst_18 : f32 to vector<4x1xf32>
      %c0_19 = arith.constant 0 : index
      %c0_20 = arith.constant 0 : index
      %25 = vector.load %arg11[%c0_19, %c0_20] : memref<4x1xf32, #tpu.memory_space<vmem>>, vector<4x1xf32>
      tpu.vector_store %arg11[%c0_19, %c0_20], %24 {strides = array<i32>} : memref<4x1xf32, #tpu.memory_space<vmem>>, vector<4x1xf32>,
      %cst_21 = arith.constant 0.000000e+00 : f32
      %26 = vector.broadcast %cst_21 : f32 to vector<4x1xf32>
      %c0_22 = arith.constant 0 : index
      %c0_23 = arith.constant 0 : index
      %27 = vector.load %arg12[%c0_22, %c0_23] : memref<4x1xf32, #tpu.memory_space<vmem>>, vector<4x1xf32>
      tpu.vector_store %arg12[%c0_22, %c0_23], %26 {strides = array<i32>} : memref<4x1xf32, #tpu.memory_space<vmem>>, vector<4x1xf32>,
    } else {
    }
    %c0 = arith.constant 0 : index
    %c0_2 = arith.constant 0 : index
    %c0_3 = arith.constant 0 : index
    %5 = vector.load %arg2[%c0, %c0_2, %c0_3] : memref<2x4x256xf32, #tpu.memory_space<vmem>>, vector<2x4x256xf32>
    %cst = arith.constant dense<0.000000e+00> : vector<2x4xf32>
    %6 = vector.multi_reduction <add>, %5, %cst [2] : vector<2x4x256xf32> to vector<2x4xf32>
    %7 = vector.shape_cast %6 : vector<2x4xf32> to vector<2x4x1xf32>
    %8 = arith.mulf %5, %5 : vector<2x4x256xf32>
    %cst_4 = arith.constant dense<0.000000e+00> : vector<2x4xf32>
    %9 = vector.multi_reduction <add>, %8, %cst_4 [2] : vector<2x4x256xf32> to vector<2x4xf32>
    %10 = vector.shape_cast %9 : vector<2x4xf32> to vector<2x4x1xf32>
    %c0_5 = arith.constant 0 : index
    %c0_6 = arith.constant 0 : index
    %11 = vector.load %arg11[%c0_5, %c0_6] : memref<4x1xf32, #tpu.memory_space<vmem>>, vector<4x1xf32>
    %cst_7 = arith.constant dense<0.000000e+00> : vector<4x1xf32>
    %12 = vector.multi_reduction <add>, %7, %cst_7 [0] : vector<2x4x1xf32> to vector<4x1xf32>
    %13 = arith.addf %11, %12 : vector<4x1xf32>
    %c0_8 = arith.constant 0 : index
    %c0_9 = arith.constant 0 : index
    %14 = vector.load %arg11[%c0_8, %c0_9] : memref<4x1xf32, #tpu.memory_space<vmem>>, vector<4x1xf32>
    tpu.vector_store %arg11[%c0_8, %c0_9], %13 {strides = array<i32>} : memref<4x1xf32, #tpu.memory_space<vmem>>, vector<4x1xf32>,
    %c0_10 = arith.constant 0 : index
    %c0_11 = arith.constant 0 : index
    %15 = vector.load %arg12[%c0_10, %c0_11] : memref<4x1xf32, #tpu.memory_space<vmem>>, vector<4x1xf32>
    %cst_12 = arith.constant dense<0.000000e+00> : vector<4x1xf32>
    %16 = vector.multi_reduction <add>, %10, %cst_12 [0] : vector<2x4x1xf32> to vector<4x1xf32>
    %17 = arith.addf %15, %16 : vector<4x1xf32>
    %c0_13 = arith.constant 0 : index
    %c0_14 = arith.constant 0 : index
    %18 = vector.load %arg12[%c0_13, %c0_14] : memref<4x1xf32, #tpu.memory_space<vmem>>, vector<4x1xf32>
    tpu.vector_store %arg12[%c0_13, %c0_14], %17 {strides = array<i32>} : memref<4x1xf32, #tpu.memory_space<vmem>>, vector<4x1xf32>,
    %c0_i32_15 = arith.constant 0 : i32
    %19 = arith.cmpi eq, %arg0, %c0_i32_15 : i32
    %c0_i32_16 = arith.constant 0 : i32
    %20 = arith.cmpi eq, %arg1, %c0_i32_16 : i32
    %21 = arith.andi %19, %20 : i1
    %22 = arith.extui %21 : i1 to i32
    %c0_i32_17 = arith.constant 0 : i32
    %23 = arith.cmpi ne, %22, %c0_i32_17 : i32
    scf.if %23 {
      %c0_18 = arith.constant 0 : index
      %c0_19 = arith.constant 0 : index
      %24 = vector.load %arg11[%c0_18, %c0_19] : memref<4x1xf32, #tpu.memory_space<vmem>>, vector<4x1xf32>
      %cst_20 = arith.constant 0.001953125 : f32
      %25 = vector.broadcast %cst_20 : f32 to vector<4x1xf32>
      %26 = arith.mulf %24, %25 : vector<4x1xf32>
      %c0_21 = arith.constant 0 : index
      %c0_22 = arith.constant 0 : index
      %27 = vector.load %arg12[%c0_21, %c0_22] : memref<4x1xf32, #tpu.memory_space<vmem>>, vector<4x1xf32>
      %cst_23 = arith.constant 0.001953125 : f32
      %28 = vector.broadcast %cst_23 : f32 to vector<4x1xf32>
      %29 = arith.mulf %27, %28 : vector<4x1xf32>
      %30 = arith.mulf %26, %26 : vector<4x1xf32>
      %31 = arith.subf %29, %30 : vector<4x1xf32>
      %cst_24 = arith.constant 0.000000e+00 : f32
      %32 = vector.broadcast %cst_24 : f32 to vector<4x1xf32>
      %33 = arith.maximumf %31, %32 : vector<4x1xf32>
      %cst_25 = arith.constant 9.99999974E-6 : f32
      %34 = vector.broadcast %cst_25 : f32 to vector<4x1xf32>
      %35 = arith.addf %33, %34 : vector<4x1xf32>
      %36 = math.rsqrt %35 : vector<4x1xf32>
      %c0_26 = arith.constant 0 : index
      %c0_27 = arith.constant 0 : index
      %37 = vector.load %arg3[%c0_26, %c0_27] : memref<4x1xf32, #tpu.memory_space<vmem>>, vector<4x1xf32>
      %38 = arith.mulf %37, %36 : vector<4x1xf32>
      %c0_28 = arith.constant 0 : index
      %c0_29 = arith.constant 0 : index
      %39 = vector.load %arg7[%c0_28, %c0_29] : memref<4x1xf32, #tpu.memory_space<vmem>>, vector<4x1xf32>
      tpu.vector_store %arg7[%c0_28, %c0_29], %38 {strides = array<i32>} : memref<4x1xf32, #tpu.memory_space<vmem>>, vector<4x1xf32>,
      %c0_30 = arith.constant 0 : index
      %c0_31 = arith.constant 0 : index
      %40 = vector.load %arg4[%c0_30, %c0_31] : memref<4x1xf32, #tpu.memory_space<vmem>>, vector<4x1xf32>
      %41 = arith.mulf %26, %38 : vector<4x1xf32>
      %42 = arith.subf %40, %41 : vector<4x1xf32>
      %c0_32 = arith.constant 0 : index
      %c0_33 = arith.constant 0 : index
      %43 = vector.load %arg8[%c0_32, %c0_33] : memref<4x1xf32, #tpu.memory_space<vmem>>, vector<4x1xf32>
      tpu.vector_store %arg8[%c0_32, %c0_33], %42 {strides = array<i32>} : memref<4x1xf32, #tpu.memory_space<vmem>>, vector<4x1xf32>,
      %cst_34 = arith.constant 1.00195694 : f32
      %44 = vector.broadcast %cst_34 : f32 to vector<4x1xf32>
      %45 = arith.mulf %33, %44 : vector<4x1xf32>
      %c0_35 = arith.constant 0 : index
      %c0_36 = arith.constant 0 : index
      %46 = vector.load %arg5[%c0_35, %c0_36] : memref<4x1xf32, #tpu.memory_space<vmem>>, vector<4x1xf32>
      %cst_37 = arith.constant 0.899999976 : f32
      %47 = vector.broadcast %cst_37 : f32 to vector<4x1xf32>
      %48 = arith.mulf %47, %46 : vector<4x1xf32>
      %cst_38 = arith.constant 1.000000e-01 : f32
      %49 = vector.broadcast %cst_38 : f32 to vector<4x1xf32>
      %50 = arith.mulf %49, %26 : vector<4x1xf32>
      %51 = arith.addf %48, %50 : vector<4x1xf32>
      %c0_39 = arith.constant 0 : index
      %c0_40 = arith.constant 0 : index
      %52 = vector.load %arg9[%c0_39, %c0_40] : memref<4x1xf32, #tpu.memory_space<vmem>>, vector<4x1xf32>
      tpu.vector_store %arg9[%c0_39, %c0_40], %51 {strides = array<i32>} : memref<4x1xf32, #tpu.memory_space<vmem>>, vector<4x1xf32>,
      %c0_41 = arith.constant 0 : index
      %c0_42 = arith.constant 0 : index
      %53 = vector.load %arg6[%c0_41, %c0_42] : memref<4x1xf32, #tpu.memory_space<vmem>>, vector<4x1xf32>
      %cst_43 = arith.constant 0.899999976 : f32
      %54 = vector.broadcast %cst_43 : f32 to vector<4x1xf32>
      %55 = arith.mulf %54, %53 : vector<4x1xf32>
      %cst_44 = arith.constant 1.000000e-01 : f32
      %56 = vector.broadcast %cst_44 : f32 to vector<4x1xf32>
      %57 = arith.mulf %56, %45 : vector<4x1xf32>
      %58 = arith.addf %55, %57 : vector<4x1xf32>
      %c0_45 = arith.constant 0 : index
      %c0_46 = arith.constant 0 : index
      %59 = vector.load %arg10[%c0_45, %c0_46] : memref<4x1xf32, #tpu.memory_space<vmem>>, vector<4x1xf32>
      tpu.vector_store %arg10[%c0_45, %c0_46], %58 {strides = array<i32>} : memref<4x1xf32, #tpu.memory_space<vmem>>, vector<4x1xf32>,
    } else {
    }
    return
  }
  func.func @transform_0(%arg0: i32, %arg1: i32) -> (i32, i32, i32) {
    %c0_i32 = arith.constant 0 : i32
    %c0_i32_0 = arith.constant 0 : i32
    return %arg0, %c0_i32, %arg1 : i32, i32, i32
  }
  func.func @transform_1(%arg0: i32, %arg1: i32) -> (i32, i32) {
    %c0_i32 = arith.constant 0 : i32
    %c0_i32_0 = arith.constant 0 : i32
    %c0_i32_1 = arith.constant 0 : i32
    return %c0_i32, %c0_i32_0 : i32, i32
  }
  func.func @transform_2(%arg0: i32, %arg1: i32) -> (i32, i32) {
    %c0_i32 = arith.constant 0 : i32
    %c0_i32_0 = arith.constant 0 : i32
    %c0_i32_1 = arith.constant 0 : i32
    return %c0_i32, %c0_i32_0 : i32, i32
  }
  func.func @transform_3(%arg0: i32, %arg1: i32) -> (i32, i32) {
    %c0_i32 = arith.constant 0 : i32
    %c0_i32_0 = arith.constant 0 : i32
    %c0_i32_1 = arith.constant 0 : i32
    return %c0_i32, %c0_i32_0 : i32, i32
  }
  func.func @transform_4(%arg0: i32, %arg1: i32) -> (i32, i32) {
    %c0_i32 = arith.constant 0 : i32
    %c0_i32_0 = arith.constant 0 : i32
    %c0_i32_1 = arith.constant 0 : i32
    return %c0_i32, %c0_i32_0 : i32, i32
  }
  func.func @transform_5(%arg0: i32, %arg1: i32) -> (i32, i32) {
    %c0_i32 = arith.constant 0 : i32
    %c0_i32_0 = arith.constant 0 : i32
    %c0_i32_1 = arith.constant 0 : i32
    return %c0_i32, %c0_i32_0 : i32, i32
  }
  func.func @transform_6(%arg0: i32, %arg1: i32) -> (i32, i32) {
    %c0_i32 = arith.constant 0 : i32
    %c0_i32_0 = arith.constant 0 : i32
    %c0_i32_1 = arith.constant 0 : i32
    return %c0_i32, %c0_i32_0 : i32, i32
  }
  func.func @transform_7(%arg0: i32, %arg1: i32) -> (i32, i32) {
    %c0_i32 = arith.constant 0 : i32
    %c0_i32_0 = arith.constant 0 : i32
    %c0_i32_1 = arith.constant 0 : i32
    return %c0_i32, %c0_i32_0 : i32, i32
  }
  func.func @transform_8(%arg0: i32, %arg1: i32) -> (i32, i32) {
    %c0_i32 = arith.constant 0 : i32
    %c0_i32_0 = arith.constant 0 : i32
    %c0_i32_1 = arith.constant 0 : i32
    return %c0_i32, %c0_i32_0 : i32, i32
  }
}

</mosaic_0001>

<bundles_post_ra>
// kernel: tpu_custom_call.1
= control target key start
LH: loop header
LB: loop body
LE: loop exit
PB: predicated region body
PF: predicated region fallthrough
CT: control target
= control target key end

     0   :  { %vm41_vm0 = vcmask 1043456   ;;  %vm30_vm1 = vcmask 3072   ;;  %v133_v20 = vmov 0.0   ;;  %s229_s0 = inlined_call_operand.vmem [shape: f32[2,4,256], index: 0, kind: input, shape index: {}]   ;;  %s230_s3 = inlined_call_operand.vmem [shape: f32[4,1], index: 3, kind: input, shape index: {}]   ;;  %s231_s4 = inlined_call_operand.vmem [shape: f32[4,1], index: 4, kind: input, shape index: {}]   ;;  %s232_s7 = inlined_call_operand.vmem [shape: f32[4,1], index: 7, kind: output, shape index: {2}]   ;;  %s233_s8 = inlined_call_operand.vmem [shape: f32[4,1], index: 8, kind: output, shape index: {3}]   ;;  %s234_s1 = inlined_call_operand.vmem [shape: f32[4,1], index: 1, kind: input, shape index: {}]   ;;  %s235_s2 = inlined_call_operand.vmem [shape: f32[4,1], index: 2, kind: input, shape index: {}]   ;;  %s236_s5 = inlined_call_operand.vmem [shape: f32[4,1], index: 5, kind: output, shape index: {0}]   ;;  %s237_s6 = inlined_call_operand.vmem [shape: f32[4,1], index: 6, kind: output, shape index: {1}]  }
   0x1   :  { %v33_v0 = vld [vmem:[%s229_s0] sm:$0xff]  ;;  %v34_v1 = vld [vmem:[%s229_s0 + $0x8] sm:$0xff]  ;;  %31 = vst.msk [vmem:[#allocation2] sm:$0xf] %vm30_vm1, %v133_v20  ;;  %32 = vst.msk [vmem:[#allocation3] sm:$0xf] %vm30_vm1, %v133_v20 }
   0x2   :  { %v37_v2 = vcombine.high %v33_v0, %v33_v0  ;;  %v42_v3 = vsel %vm41_vm0, %v33_v0, 0.0  ;;  %v52_v4 = vmul.f32 %v33_v0, %v33_v0  ;;  %v38_v5 = vcombine.high %v34_v1, %v34_v1  ;;  %v102_v35 = vld [vmem:[%s230_s3] sm:$0xf] }
   0x3   :  { %v47_v6 = vsel %vm41_vm0, %v34_v1, 0.0  ;;  %v53_v7 = vmul.f32 %v34_v1, %v34_v1  ;;  %v103_v37 = vmul.f32 0.9, %v102_v35  ;;  %v107_v45 = vld [vmem:[%s231_s4] sm:$0xf] }
   0x4   :  { %v43_v8 = vsel %vm41_vm0, %v37_v2, 0.0  ;;  %v56_v9 = vcombine.high %v52_v4, %v52_v4  ;;  %v60_v10 = vsel %vm41_vm0, %v52_v4, 0.0  ;;  %v48_v11 = vsel %vm41_vm0, %v38_v5, 0.0  ;;  %v94_v52 = vld [vmem:[%s234_s1] sm:$0xf] }
   0x5   :  { %v44_v12 = vadd.f32 %v43_v8, %v42_v3  ;;  %v57_v13 = vcombine.high %v53_v7, %v53_v7  ;;  %v65_v15 = vsel %vm41_vm0, %v53_v7, 0.0  ;;  %v49_v17 = vadd.f32 %v48_v11, %v47_v6  ;;  %v97_v55 = vld [vmem:[%s235_s2] sm:$0xf] }
   0x6   :  { %v61_v14 = vsel %vm41_vm0, %v56_v9, 0.0  ;;  %v108_v47 = vmul.f32 0.9, %v107_v45 }
   0x7   :  { %45 = vadd.xlane.f32.xlu0 %v44_v12  ;;  %v62_v16 = vadd.f32 %v61_v14, %v60_v10  ;;  %v66_v18 = vsel %vm41_vm0, %v57_v13, 0.0 }
   0x8   :  { %v67_v19 = vadd.f32 %v66_v18, %v65_v15  ;;  %v70_v25 = vld [vmem:[#allocation2] sm:$0xf]  ;;  %v77_v30 = vld [vmem:[#allocation3] sm:$0xf] }
   0x9   :  { %63 = vadd.xlane.f32.xlu1 %v62_v16 }
   0xb   :  { %50 = vadd.xlane.f32.xlu0 %v49_v17 }
   0xd   :  { %68 = vadd.xlane.f32.xlu1 %v67_v19 }
  0x90   :  { %v46_v21 = vpop.xlane.xlu0 %45 }
  0x91   :  { %v71_v24 = vsel %vm41_vm0, %v46_v21, 0.0 }
  0x92   :  { %v64_v22 = vpop.xlane.xlu1 %63 }
  0x93   :  { %v78_v29 = vsel %vm41_vm0, %v64_v22, 0.0 }
  0x94   :  { %v51_v23 = vpop.xlane.xlu0 %50 }
  0x95   :  { %v72_v26 = vsel %vm41_vm0, %v51_v23, 0.0 }
  0x96   :  { %v73_v27 = vadd.f32 %v72_v26, %v71_v24  ;;  %v69_v28 = vpop.xlane.xlu1 %68 }
  0x97   :  { %v79_v31 = vsel %vm41_vm0, %v69_v28, 0.0 }
  0x98   :  { %v74_v32 = vadd.f32 %v73_v27, %v70_v25  ;;  %v80_v33 = vadd.f32 %v79_v31, %v78_v29 }
  0x9a   :  { %76 = vst.msk [vmem:[#allocation2] sm:$0xf] %vm30_vm1, %v74_v32  ;;  %v81_v34 = vadd.f32 %v80_v33, %v77_v30 }
  0x9c   :  { %82 = vst.msk [vmem:[#allocation3] sm:$0xf] %vm30_vm1, %v81_v34 }
  0xa1   :  { %v85_v36 = vld [vmem:[#allocation2] sm:$0xf] }
  0xa2   :  { %v86_v38 = vmul.f32 0.001953125, %v85_v36 }
  0xa3   :  { %v87_v39 = vld [vmem:[#allocation3] sm:$0xf] }
  0xa4   :  { %v104_v40 = vmul.f32 0.1, %v86_v38  ;;  %v88_v41 = vmul.f32 0.001953125, %v87_v39  ;;  %v89_v42 = vmul.f32 %v86_v38, %v86_v38 }
  0xa6   :  { %v105_v43 = vadd.f32 %v104_v40, %v103_v37  ;;  %v90_v44 = vsub.f32 %v88_v41, %v89_v42 }
  0xa8   :  { %106 = vst.msk [vmem:[%s232_s7] sm:$0xf] %vm30_vm1, %v105_v43  ;;  %v91_v46 = vmax.f32 %v90_v44, 0.0 }
  0xaa   :  { %v92_v48 = vadd.f32 1e-05, %v91_v46  ;;  %v101_v49 = vmul.f32 1.0019569, %v91_v46 }
  0xac   :  { %131 = vrsqrt.f32 %v92_v48  ;;  %v109_v50 = vmul.f32 0.1, %v101_v49 }
  0xae   :  { %v110_v51 = vadd.f32 %v109_v50, %v108_v47 }
  0xb0   :  { %111 = vst.msk [vmem:[%s233_s8] sm:$0xf] %vm30_vm1, %v110_v51 }
  0xb9   :  { %v132_v53 = vpop.eup %131 }
  0xba   :  { %v95_v54 = vmul.f32 %v132_v53, %v94_v52 }
  0xbc   :  { %96 = vst.msk [vmem:[%s236_s5] sm:$0xf] %vm30_vm1, %v95_v54  ;;  %v98_v56 = vmul.f32 %v95_v54, %v86_v38 }
  0xbe   :  { %v99_v57 = vsub.f32 %v97_v55, %v98_v56 }
  0xc0   :  { %100 = vst.msk [vmem:[%s237_s6] sm:$0xf] %vm30_vm1, %v99_v57 }

</bundles_post_ra>
